<compile_context>
chip_gen: v7x
topology: tpu7x:2x2x1
jax: 0.10.0
libtpu: 0.0.40
codegen_flags: <defaults>
</compile_context>

<pallas_src>
import functools

import jax
import jax.numpy as jnp
from jax.experimental import pallas as pl
from jax.experimental.pallas import tpu as pltpu


def _rmsnorm_kernel(x_ref, w_ref, o_ref, *, eps, inv_h):
    # x_ref: (tile_rows, H), w_ref: (1, H), o_ref: (tile_rows, H)
    x = x_ref[...].astype(jnp.float32)
    ms = jnp.sum(x * x, axis=-1, keepdims=True) * inv_h   # mean via sum * (1/H), no divide
    inv = jax.lax.rsqrt(ms + eps)                          # EUP rsqrt
    # Match the PyTorch module: downcast the normalized activations to the
    # input dtype BEFORE the gain multiply (`g * hidden_states.to(dtype)`).
    xn = (x * inv).astype(o_ref.dtype)
    o_ref[...] = (w_ref[...] * xn).astype(o_ref.dtype)


def _round_up(x, m):
    return -(-x // m) * m


def _pick_tile_rows(rows, hidden, in_dtype):
    """Row-tile size targeting ~2 MiB of input per block, sublane-pack aligned."""
    in_b = jnp.dtype(in_dtype).itemsize
    # Sublane packing granularity: 8 rows per 32-bit vreg tile, x pack factor
    # for sub-32-bit dtypes (16 for bf16, 32 for int8/fp8).
    pack = 8 * max(1, 4 // in_b)
    # DMA-saturation target (~2 MiB input per block). Per-grid-step overhead is
    # ~0.35 us, so this is already near the HBM roofline; bigger tiles only
    # inflate VMEM footprint / fp32 temporaries (critical on v7x's 32 MiB
    # scoped VMEM) without buying bandwidth.
    dma_rows = max(pack, ((2 * 1024 * 1024) // max(1, hidden * in_b)) // pack * pack)
    # Keep the grid >= ~8 blocks when rows allow so v7x megacore can shard the
    # row axis across both TensorCores and pipelining stays deep.
    depth_rows = max(pack, _round_up(-(-rows // 8), pack))
    tile = min(dma_rows, depth_rows, _round_up(max(rows, 1), pack))
    return int(max(pack, (tile // pack) * pack))


def llama_rmsnorm(hidden_states, weight, eps=1e-6, *, tile_rows=None):
    """hidden_states: (..., H); weight: (H,). Returns same shape/dtype as input."""
    orig_shape = hidden_states.shape
    H = orig_shape[-1]
    x2d = hidden_states.reshape(-1, H)
    rows = x2d.shape[0]
    out_dtype = hidden_states.dtype
    in_b = jnp.dtype(hidden_states.dtype).itemsize
    out_b = jnp.dtype(out_dtype).itemsize

    if tile_rows is None:
        tile_rows = _pick_tile_rows(rows, H, hidden_states.dtype)

    # No padding: Pallas clips the last block. Safe because the reduction is
    # strictly per-row, so garbage rows in the clipped final input block only
    # produce garbage in output rows that are never written back.
    grid_rows = pl.cdiv(rows, tile_rows)

    w2d = weight.reshape(1, H)

    cost = pl.CostEstimate(
        flops=4 * rows * H,                       # square, reduce-add, scale, gain
        transcendentals=rows,                     # one rsqrt per row
        bytes_accessed=rows * H * (in_b + out_b) + H * jnp.dtype(weight.dtype).itemsize,
    )

    out = pl.pallas_call(
        functools.partial(_rmsnorm_kernel, eps=eps, inv_h=1.0 / H),
        out_shape=jax.ShapeDtypeStruct((rows, H), out_dtype),
        grid_spec=pltpu.PrefetchScalarGridSpec(
            num_scalar_prefetch=0,
            grid=(grid_rows,),
            in_specs=[
                pl.BlockSpec((tile_rows, H), lambda i: (i, 0)),
                # Invariant gain vector: constant index_map keeps it resident.
                pl.BlockSpec((1, H), lambda i: (0, 0)),
            ],
            out_specs=pl.BlockSpec((tile_rows, H), lambda i: (i, 0)),
        ),
        compiler_params=pltpu.CompilerParams(
            # "parallel" lets v7x shard row tiles across both TensorCores.
            dimension_semantics=("parallel",),
            # 32 MiB is within scoped limits on every generation (v7x default)
            # and ample for 2 MiB double-buffered blocks + fp32 temporaries.
            vmem_limit_bytes=32 * 1024 * 1024,
        ),
        cost_estimate=cost,
    )(x2d, w2d)

    return out.reshape(orig_shape)


def llama_rmsnorm_ref(hidden_states, weight, eps=1e-6):
    """Pure-JAX reference mirroring the PyTorch module's dtype ordering."""
    dtype = hidden_states.dtype
    x = hidden_states.astype(jnp.float32)
    x = x * jax.lax.rsqrt(jnp.mean(x * x, axis=-1, keepdims=True) + eps)
    return (weight * x.astype(dtype)).astype(dtype)


if __name__ == "__main__":
    rms_norm_eps = 1e-6
    key = jax.random.PRNGKey(0)
    k1, k2, k3 = jax.random.split(key, 3)

    # Case 1: fp32, H a multiple of 128 (lane-dense store path).
    batch, seq, n_embed = 2, 8, 256
    x = jax.random.normal(k1, (batch, seq, n_embed), dtype=jnp.float32)
    weight = (1.0 + 0.1 * jax.random.normal(k3, (n_embed,), dtype=jnp.float32))
    out = jax.block_until_ready(llama_rmsnorm(x, weight, eps=rms_norm_eps))
    ref = llama_rmsnorm_ref(x, weight, eps=rms_norm_eps)
    assert out.shape == x.shape and out.dtype == x.dtype
    assert jnp.allclose(out, ref, atol=1e-5, rtol=1e-5)

    # Case 2: bf16 input/weight (sub-32-bit packing + downcast-before-gain path).
    xb = jax.random.normal(k2, (batch, seq, n_embed), dtype=jnp.float32).astype(jnp.bfloat16)
    wb = weight.astype(jnp.bfloat16)
    outb = jax.block_until_ready(llama_rmsnorm(xb, wb, eps=rms_norm_eps))
    refb = llama_rmsnorm_ref(xb, wb, eps=rms_norm_eps)
    assert outb.shape == xb.shape and outb.dtype == xb.dtype
    assert jnp.allclose(outb.astype(jnp.float32), refb.astype(jnp.float32),
                        atol=2e-2, rtol=2e-2)

    # Case 3: rows not divisible by the tile (exercises the clipped last block,
    # no wrapper-side pad/slice).
    xr = jax.random.normal(k1, (3, 5, n_embed), dtype=jnp.float32)
    outr = jax.block_until_ready(llama_rmsnorm(xr, weight, eps=rms_norm_eps))
    refr = llama_rmsnorm_ref(xr, weight, eps=rms_norm_eps)
    assert outr.shape == xr.shape
    assert jnp.allclose(outr, refr, atol=1e-5, rtol=1e-5)

    print("KERNEL_OK")
</pallas_src>

<mosaic_0001>
module attributes {stable_mosaic.version = 11 : i64} {
  func.func @_rmsnorm_kernel(%arg0: i32, %arg1: memref<8x256xf32, #tpu.memory_space<vmem>>, %arg2: memref<1x256xf32, #tpu.memory_space<vmem>>, %arg3: memref<8x256xf32, #tpu.memory_space<vmem>>) attributes {dimension_semantics = [#tpu.dimension_semantics<parallel>], iteration_bounds = array<i64: 2>, scalar_prefetch = 0 : i64, scratch_operands = 0 : i64, tpu.core_type = #tpu.core_type<tc>, window_params = [{transform_indices = @transform_0, window_bounds = array<i64: 8, 256>}, {pipeline_mode = #tpu.pipeline_mode<synchronous>, transform_indices = @transform_1, window_bounds = array<i64: 1, 256>}, {transform_indices = @transform_2, window_bounds = array<i64: 8, 256>}]} {
    %c0 = arith.constant 0 : index
    %c0_0 = arith.constant 0 : index
    %0 = vector.load %arg1[%c0, %c0_0] : memref<8x256xf32, #tpu.memory_space<vmem>>, vector<8x256xf32>
    %1 = arith.mulf %0, %0 : vector<8x256xf32>
    %cst = arith.constant dense<0.000000e+00> : vector<8xf32>
    %2 = vector.multi_reduction <add>, %1, %cst [1] : vector<8x256xf32> to vector<8xf32>
    %3 = vector.shape_cast %2 : vector<8xf32> to vector<8x1xf32>
    %cst_1 = arith.constant 3.906250e-03 : f32
    %4 = vector.broadcast %cst_1 : f32 to vector<8x1xf32>
    %5 = arith.mulf %3, %4 : vector<8x1xf32>
    %cst_2 = arith.constant 9.99999997E-7 : f32
    %6 = vector.broadcast %cst_2 : f32 to vector<8x1xf32>
    %7 = arith.addf %5, %6 : vector<8x1xf32>
    %8 = math.rsqrt %7 : vector<8x1xf32>
    %9 = vector.broadcast %8 : vector<8x1xf32> to vector<8x256xf32>
    %10 = arith.mulf %0, %9 : vector<8x256xf32>
    %c0_3 = arith.constant 0 : index
    %c0_4 = arith.constant 0 : index
    %11 = vector.load %arg2[%c0_3, %c0_4] : memref<1x256xf32, #tpu.memory_space<vmem>>, vector<1x256xf32>
    %12 = vector.broadcast %11 : vector<1x256xf32> to vector<8x256xf32>
    %13 = arith.mulf %12, %10 : vector<8x256xf32>
    %c0_5 = arith.constant 0 : index
    %c0_6 = arith.constant 0 : index
    %14 = vector.load %arg3[%c0_5, %c0_6] : memref<8x256xf32, #tpu.memory_space<vmem>>, vector<8x256xf32>
    tpu.vector_store %arg3[%c0_5, %c0_6], %13 {strides = array<i32>} : memref<8x256xf32, #tpu.memory_space<vmem>>, vector<8x256xf32>,
    return
  }
  func.func @transform_0(%arg0: i32) -> (i32, i32) {
    %c0_i32 = arith.constant 0 : i32
    %c0_i32_0 = arith.constant 0 : i32
    return %arg0, %c0_i32 : i32, i32
  }
  func.func @transform_1(%arg0: i32) -> (i32, i32) {
    %c0_i32 = arith.constant 0 : i32
    %c0_i32_0 = arith.constant 0 : i32
    %c0_i32_1 = arith.constant 0 : i32
    return %c0_i32, %c0_i32_0 : i32, i32
  }
  func.func @transform_2(%arg0: i32) -> (i32, i32) {
    %c0_i32 = arith.constant 0 : i32
    %c0_i32_0 = arith.constant 0 : i32
    return %arg0, %c0_i32 : i32, i32
  }
}

</mosaic_0001>

<bundles_post_ra>
// kernel: tpu_custom_call.1
= control target key start
LH: loop header
LB: loop body
LE: loop exit
PB: predicated region body
PF: predicated region fallthrough
CT: control target
= control target key end

     0   :  { %7 = vsyncpa [#allocation3], 0  ;;  %s616_s0 = inlined_call_operand.hbm [shape: f32[16,256], index: 0, kind: input, shape index: {}]   ;;  %s617_s1 = inlined_call_operand.vmem [shape: f32[1,256], index: 1, kind: input, shape index: {}]   ;;  %s618_s2 = inlined_call_operand.hbm [shape: f32[16,256], index: 2, kind: output, shape index: {}]  }
   0x1   :  { %9 = vsyncpa [#allocation3 + $0x1], 0 }
   0x2   :  { %10 = vsyncpa [#allocation4], 0 }
   0x3   :  { %12 = vsyncpa [#allocation4 + $0x1], 0  ;;  %s452_s9 = smov 0   ;;  %s454_s10 = smov 0  }
   0x4   :  { %s456_s11 = smov 0   ;;  %s458_s12 = smov 0  }
   0x5 LB: > { %s473_s13 = sadd.s32 4294967295, %s433_s12   ;;  %s273_s14 = sadd.s32 4294967294, %s433_s12   ;;  %s433_s12 = sphi %s458_s12, %s633_s12   ;;  %s429_s11 = sphi %s456_s11, %s632_s11   ;;  %s425_s10 = sphi %s454_s10, %s631_s10   ;;  %s421_s9 = sphi %s452_s9, %s630_s9  }
   0x6   : > { %s477_s15 = sadd.s32 1, %s433_s12   ;;  %s25_s16 = sadd.s32 1, %s429_s11 }
   0x7   : > { %s22_s17 = ssub.s32 %s433_s12, %s477_s15  ;;  %p32_p0 = scmp.ne.s32.totalorder %s429_s11, %s425_s10 }
   0x8   : > { %p23_p1 = scmp.eq.s32.totalorder %s22_s17, 0  ;;  %p33_p2 = scmp.eq.s32.totalorder %s433_s12, 0 }
   0x9   : > { %p38_p3 = scmp.ne.s32.totalorder %s425_s10, %s421_s9  ;;  %p39_p4 = scmp.eq.s32.totalorder %s473_s13, 0 }
   0xa   : > { %s489_s18 = scalar_select %p23_p1, %s429_s11, %s25_s16  }
   0xb   : > { %p491_p5 = por %p33_p2, %p32_p0  ;;  %p495_p6 = por %p39_p4, %p38_p3 }
   0xc   : > { %p83_p7 = scmp.eq.s32.totalorder %s473_s13, 1  ;;  %p89_p8 = scmp.eq.s32.totalorder %s273_s14, 1 }
   0xd   : > { %p301_p10 = scmp.lt.s32.totalorder %s433_s12, 2  ;;  %s112_s23 = sand.u32 1, %s429_s11  }
   0xe   : > { %p502_p11 = por %p83_p7, %p32_p0  ;;  %p506_p12 = por %p89_p8, %p38_p3 }
   0xf   : > { %s287_s24 = sshll.u32 %s433_s12, 8  ;;  %s276_s25 = sshll.u32 %s112_s23, 4 }
  0x10   : > { %s622_s21 = scalar_select %p502_p11, 1, 0 }
  0x11   : > { %s623_s22 = scalar_select %p506_p12, 1, 0 }
  0x12   : > { %s515_s28 = scalar_lea.hbm %s616_s0, %s287_s24  ;;  %s116_s29 = scalar_lea.vmem [#allocation2], %s276_s25 }
  0x13   : > { %s124_s30 = sshll.u32 %s116_s29, 4  ;;  %p519_p13 = pnand %p301_p10, %p491_p5  ;;  %s523_s30 = int_to_ptr.vmem [resolvable:$true] %s124_s30 }
  0x14   : > { %s113_s4 = scalar_lea.sflag [#allocation3], %s112_s23  ;;  %s337_s5 = scalar_lea.hbm %s515_s28, 256 }
  0x15   : > { %p338_p2 = scmp.ne.s32.totalorder %s515_s28, %s337_s5  ;;  %p339_p3 = pneg %p519_p13 }
  0x16   : > { %s342_s8 = scalar_lea.hbm %s616_s0, 512  ;;  %p343_p5 = scmp.lt.u32.totalorder %s515_s28, %s616_s0 }
  0x17   : > { %p340_p4 = pnand %p339_p3, %p338_p2  ;;  %p344_p8 = scmp.lt.u32.totalorder %s342_s8, %s337_s5 }
  0x18   : > { %p346_p9 = scmp.lt.u32.totalorder %s337_s5, %s515_s28 }
  0x19   : > { %p341_p7 = pneg %p340_p4  ;;  %p345_p10 = por %p344_p8, %p343_p5 }
  0x1b   : > { %p347_p0 = por %p346_p9, %p345_p10 }
  0x1d   : > { %p348_p1 = pnand %p347_p0, %p341_p7 }
  0x1f   : > { %351 = shalt.err (!%p348_p1)
}
  0x20   : > { %s352_s17 = scalar_lea.vmem %s523_s30, 256  ;;  %s435_s19 = smov [#allocation2]  }
  0x21   : > { %p353_p2 = scmp.ne.s32.totalorder %s523_s30, %s352_s17  ;;  %s357_s23 = sshll.u32 %s435_s19, 4  ;;  %s358_s23 = int_to_ptr.vmem [resolvable:$false] %s357_s23 }
  0x22   : > { %s359_s24 = scalar_lea.vmem %s358_s23, 512  ;;  %p360_p11 = scmp.lt.s32.totalorder %s523_s30, %s358_s23 }
  0x23   : > { %p355_p4 = pnand %p353_p2, %p339_p3  ;;  %p361_p5 = scmp.lt.s32.totalorder %s359_s24, %s352_s17 }
  0x25   : > { %p356_p12 = pneg %p355_p4  ;;  %p362_p8 = por %p361_p5, %p360_p11 }
  0x27   : > { %p363_p9 = pnand %p362_p8, %p356_p12 }
  0x29   : > { %366 = shalt.err (!%p363_p9)
}
  0x2a   : > { %296 = dma.hbm_to_vmem [thread:$0]  (!%p519_p13), %s515_s28, 256, %s523_s30, %s113_s4  }
  0x2b   : > { %p625_p0 = scmp.lt.s32.totalorder %s433_s12, 3  ;;  %p626_p1 = scmp.ge.s32.totalorder %s433_s12, 1 }
  0x2d   : > { %p130_p3 = pnand %p626_p1, %p625_p0 }
  0x2e   : > { %s557_s25 = sand.u32 (!%p130_p3), 1, %s425_s10  }
  0x2f   : > { %133 = sbr.rel (%p130_p3) target bundleno = 235 (0xeb), region = 28  ;;  %s280_s26 = sshll.u32 (!%p130_p3), %s557_s25, 4 }
  0x30   : > { %s136_s27 = scalar_lea.sflag (!%p130_p3), [#allocation3], %s557_s25  ;;  %s139_s29 = scalar_lea.vmem (!%p130_p3), [#allocation2], %s280_s26 }
  0x36   : > { %412 = dma.done.wait (%p495_p6), %s136_s27, 256  }
  0x37   : > { %414 = vsyncadd (%p495_p6), %s136_s27, 4294967040  ;;  %v160_v0 = vld [vmem:[%s139_s29] sm:$0xff]  ;;  %v161_v1 = vld [vmem:[%s139_s29 + $0x8] sm:$0xff]  ;;  %v174_v7 = vlaneseq  ;;  %s288_s20 = sshll.u32 %s473_s13, 8  ;;  %s159_s3 = scalar_lea.vmem [#allocation5], %s280_s26 }
  0x38   : > { %v162_v2 = vmul.f32 %v160_v0, %v160_v0  ;;  %v163_v3 = vmul.f32 %v161_v1, %v161_v1  ;;  %v172_v12 = vld [vmem:[%s617_s1] sm:$0x3]  ;;  %s203_s4 = sshll.u32 %s159_s3, 4  ;;  %s572_s7 = scalar_lea.hbm %s618_s2, %s288_s20  ;;  %s574_s4 = int_to_ptr.vmem [resolvable:$true] %s203_s4 }
  0x39   : > { %v175_v9 = vshrl.u32 %v174_v7, 7  ;;  %s189_s8 = scalar_lea.sflag [#allocation4], %s557_s25  ;;  %s367_s13 = scalar_lea.vmem %s574_s4, 256 }
  0x3a   : > { %v164_v4 = vadd.f32 %v163_v3, %v162_v2  ;;  %p368_p6 = scmp.ne.s32.totalorder %s574_s4, %s367_s13  ;;  %p627_p11 = scmp.ne.s32.totalorder %s622_s21, 0 }
  0x3b   : > { %v176_v10 = vsub.s32 0, %v175_v9  ;;  %v180_v11 = vsub.s32 1, %v175_v9  ;;  %s436_s14 = smov [#allocation5]  }
  0x3c   : > { %165 = vadd.xlane.f32.xlu0 %v164_v4  ;;  %p369_p12 = pnand %p368_p6, %p627_p11  ;;  %s371_s16 = sshll.u32 %s436_s14, 4  ;;  %s372_s16 = int_to_ptr.vmem [resolvable:$false] %s371_s16 }
  0x3d   : > { %v177_v13 = vrot.slane %v172_v12, %v176_v10  ;;  %v181_v14 = vrot.slane %v172_v12, %v180_v11  ;;  %s373_s17 = scalar_lea.vmem %s372_s16, 512  ;;  %p374_p7 = scmp.lt.s32.totalorder %s574_s4, %s372_s16 }
  0x3e   : > { %p370_p13 = pneg %p369_p12  ;;  %p375_p10 = scmp.lt.s32.totalorder %s373_s17, %s367_s13 }
  0x40   : > { %p376_p2 = por %p375_p10, %p374_p7 }
  0x42   : > { %p377_p4 = pnand %p376_p2, %p370_p13 }
  0xc9   : > { %v166_v5 = vpop.xlane.xlu0 %165 }
  0xca   : > { %v167_v6 = vmul.f32 0.00390625, %v166_v5 }
  0xcc   : > { %v168_v8 = vadd.f32 1e-06, %v167_v6 }
  0xce   : > { %335 = vrsqrt.f32 %v168_v8 }
  0xd8   : > { %v336_v15 = vpop.eup %335 }
  0xd9   : > { %v170_v16 = vmul.f32 %v336_v15, %v160_v0  ;;  %v171_v17 = vmul.f32 %v336_v15, %v161_v1 }
  0xdb   : > { %v184_v18 = vmul.f32 %v177_v13, %v170_v16  ;;  %v185_v19 = vmul.f32 %v181_v14, %v171_v17 }
  0xdd   : > { %186 = vst [vmem:[%s159_s3] sm:$0xff] %v184_v18  ;;  %187 = vst [vmem:[%s159_s3 + $0x8] sm:$0xff] %v185_v19 }
  0xde   : > { %380 = shalt.err (!%p377_p4)
}
  0xdf   : > { %s381_s19 = scalar_lea.hbm %s572_s7, 256  ;;  %s385_s25 = scalar_lea.hbm %s618_s2, 512 }
  0xe0   : > { %p382_p5 = scmp.ne.s32.totalorder %s572_s7, %s381_s19  ;;  %p386_p0 = scmp.lt.u32.totalorder %s572_s7, %s618_s2 }
  0xe1   : > { %p387_p1 = scmp.lt.u32.totalorder %s385_s25, %s381_s19  ;;  %p389_p6 = scmp.lt.u32.totalorder %s381_s19, %s572_s7 }
  0xe2   : > { %p383_p8 = pnand %p382_p5, %p627_p11 }
  0xe3   : > { %p388_p3 = por %p387_p1, %p386_p0 }
  0xe4   : > { %p384_p9 = pneg %p383_p8 }
  0xe5   : > { %p390_p12 = por %p389_p6, %p388_p3 }
  0xe7   : > { %p391_p13 = pnand %p390_p12, %p384_p9 }
  0xe9   : > { %394 = shalt.err (!%p391_p13)
}
  0xea   : > { %291 = dma.vmem_to_hbm [thread:$0]  (%p627_p11), %s574_s4, 256, %s572_s7, %s189_s8  }
  0xeb PF: > { %s215_s29 = sand.u32 1, %s421_s9   ;;  %p628_p7 = scmp.ne.s32.totalorder %s623_s22, 0 }
  0xec   : > { %p629_p10 = scmp.ge.s32.totalorder %s433_s12, 2  ;;  %s216_s28 = scalar_lea.sflag [#allocation4], %s215_s29 }
  0xee   : > { %p298_p2 = pnand %p629_p10, %p628_p7 }
  0xf0   : > { %416 = dma.done.wait (!%p298_p2), %s216_s28, 256  }
  0xf1   : > { %418 = vsyncadd (!%p298_p2), %s216_s28, 4294967040  ;;  %p15_p4 = scmp.ge.s32.totalorder %s477_s15, 4   ;;  %s630_s9 = smov %s425_s10 }
  0xf2   : > { %s631_s10 = smov %s429_s11  ;;  %s632_s11 = smov %s489_s18 }
  0xf3   : > { %s633_s12 = smov %s477_s15  ;;  %17 = sbr.rel (!%p15_p4) target bundleno = 5 (0x5), region = 73 }
  0xfa   :  { %221 = vsyncpa [#allocation3], 1 }
  0xfb   :  { %223 = vsyncpa [#allocation3 + $0x1], 1 }
  0xfc   :  { %224 = vsyncpa [#allocation4], 1 }
  0xfd   :  { %226 = vsyncpa [#allocation4 + $0x1], 1 }

</bundles_post_ra>
